<compile_context>
chip_gen: v7x
topology: tpu7x:2x2x1
jax: 0.10.0
libtpu: 0.0.40
codegen_flags: <defaults>
</compile_context>

<pallas_src>
import numpy as np
import jax
import jax.numpy as jnp
from jax.experimental import pallas as pl
from jax.experimental.pallas import tpu as pltpu


# ---------------------------------------------------------------------------
# Fused placement kernel: zero-fill + channel-0 placement + cons broadcast.
# ---------------------------------------------------------------------------
def _place_kernel(out_src_ref, cons_src_ref, out_ref, cons_ref):
    # Grid = (row_tiles, B, C_new).  One step writes one (T2, 2W) tile of one
    # (b, c) output channel for both `out` and `cons`.
    c = pl.program_id(2)

    @pl.when(c == 0)
    def _write_channel0():
        # interleaved channel-0 data (cast from input dtype) + shared cons tile
        out_ref[...] = out_src_ref[...].astype(out_ref.dtype)
        cons_ref[...] = cons_src_ref[...].astype(cons_ref.dtype)

    @pl.when(c != 0)
    def _write_zeros():
        # reference only ever fills channel 0; all other channels are zero
        out_ref[...] = jnp.zeros_like(out_ref)
        cons_ref[...] = jnp.zeros_like(cons_ref)


def _pick_row_tile(rows, row_elems, step=8, min_tiles=1, budget_elems=(1 << 18)):
    """Largest `step`-multiple divisor of `rows` whose (tile, row_elems) f32
    block stays under ~1 MiB (and yields >= min_tiles grid steps when
    possible); falls back to the full extent, which is always legal."""
    cap = max(step, min(budget_elems // max(1, row_elems),
                        rows // max(1, min_tiles)))
    best = None
    t = step
    while t <= min(rows, cap):
        if rows % t == 0:
            best = t
        t += step
    return best if best is not None else rows


def _interleave_2x2(planes):
    """(B, 4, H, W) planes [p0->(0,0), p1->(1,0), p2->(0,1), p3->(1,1)] ->
    (B, 2H, 2W) pixel-interleaved (2x2 depth-to-space)."""
    B, _, H, W = planes.shape
    p = planes.reshape(B, 2, 2, H, W)       # (B, dc, dr, H, W)
    p = p.transpose(0, 3, 2, 4, 1)          # (B, H, dr, W, dc)
    return p.reshape(B, 2 * H, 2 * W)


def unsqueeze_cons_layer(x, factor=2, logdet=None, reverse=False):
    """Forward pass of UnSqueezeConsLayer (non-reverse path)."""
    assert not reverse, "only the forward (unsqueeze) path is implemented"
    assert factor == 2, "reference index construction hard-codes factor == 2"
    B, C, H, W = x.shape
    assert C % (factor * factor) == 0
    assert H == W, "reference index construction requires H == W"
    C_new = C // 4
    H2, W2 = 2 * H, 2 * W

    # ---- channel-0 "out" source: 2x2 depth-to-space of x[:, :4] -------------
    # Sliced BEFORE any cast and kept in the input dtype; the only f32
    # promotion happens on the in-kernel store (faithful to torch.zeros f32).
    out_src = _interleave_2x2(x[:, :4])                       # (B, 2H, 2W)

    # ---- cons source: 6 elementwise ops on batch-0 planes + interleave ------
    # (tiny: one (2H, 2W) plane, shared by every batch element)
    a = x[0, :3].astype(jnp.float32)                          # (3, H, W)
    s01 = a[0] + a[1]
    s3 = jnp.ones((H, W), jnp.float32)
    s2 = (a[0] + 1.0) / 2.0
    s1 = (s01 + 1.0) / 3.0
    s0 = (s01 + a[2] + 1.0) / 4.0
    cons_src = _interleave_2x2(jnp.stack([s3, s2, s1, s0])[None])[0]  # (2H, 2W)

    # ---- single fused Pallas pass producing both full outputs ---------------
    sub = 8 * max(1, 4 // jnp.dtype(x.dtype).itemsize)        # 8 f32 / 16 bf16
    T2 = _pick_row_tile(H2, W2, step=sub,
                        min_tiles=2 if B * C_new == 1 else 1)
    grid = (H2 // T2, B, C_new)
    out_sds = jax.ShapeDtypeStruct((B, C_new, H2, W2), jnp.float32)

    out, cons = pl.pallas_call(
        _place_kernel,
        out_shape=(out_sds, out_sds),
        grid=grid,
        in_specs=[
            # channel-0 data: index ignores c -> fetched once per (b, row-tile)
            pl.BlockSpec((None, T2, W2), lambda h, b, c: (b, h, 0)),
            # cons source: index ignores (b, c) -> resident across batch/channel
            pl.BlockSpec((T2, W2), lambda h, b, c: (h, 0)),
        ],
        out_specs=(
            pl.BlockSpec((None, None, T2, W2), lambda h, b, c: (b, c, h, 0)),
            pl.BlockSpec((None, None, T2, W2), lambda h, b, c: (b, c, h, 0)),
        ),
        compiler_params=pltpu.CompilerParams(
            dimension_semantics=("parallel", "parallel", "arbitrary")),
    )(out_src, cons_src)

    return out, cons, logdet


# ---------------------------------------------------------------------------
# Pure-numpy restatement of unsqueeze2dCons semantics (cons from batch 0).
# ---------------------------------------------------------------------------
def _reference_numpy(x):
    x = np.asarray(x, dtype=np.float32)
    B, C, H, W = x.shape
    out = np.zeros((B, C // 4, 2 * H, 2 * W), np.float32)
    cons = np.zeros_like(out)
    a = x[0]
    s3 = np.ones((H, W), np.float32)
    s2 = (a[0] + 1.0) / 2.0
    s1 = (a[0] + a[1] + 1.0) / 3.0
    s0 = (a[0] + a[1] + a[2] + 1.0) / 4.0
    for t in range(B):
        out[t, 0, 0::2, 0::2] = x[t, 0]
        out[t, 0, 1::2, 0::2] = x[t, 1]
        out[t, 0, 0::2, 1::2] = x[t, 2]
        out[t, 0, 1::2, 1::2] = x[t, 3]
        cons[t, 0, 0::2, 0::2] = s3
        cons[t, 0, 1::2, 0::2] = s2
        cons[t, 0, 0::2, 1::2] = s1
        cons[t, 0, 1::2, 1::2] = s0
    return out, cons


if __name__ == "__main__":
    fwd = jax.jit(unsqueeze_cons_layer)

    key = jax.random.PRNGKey(0)
    # (B, C, H, W): exercises batch broadcast and (second case) the zero
    # channels c > 0 of the fused kernel.
    for shape in [(2, 4, 16, 16), (1, 8, 16, 16)]:
        key, sub = jax.random.split(key)
        x = jax.random.normal(sub, shape, dtype=jnp.float32)

        out, cons, logdet = fwd(x)
        out = jax.block_until_ready(out)
        cons = jax.block_until_ready(cons)

        ref_out, ref_cons = _reference_numpy(np.asarray(x))
        np.testing.assert_allclose(np.asarray(out), ref_out, rtol=1e-6, atol=1e-6)
        np.testing.assert_allclose(np.asarray(cons), ref_cons, rtol=1e-6, atol=1e-6)
        assert logdet is None

    print("KERNEL_OK")
</pallas_src>

<mosaic_0001>
module attributes {stable_mosaic.version = 11 : i64} {
  func.func @_place_kernel(%arg0: i32, %arg1: i32, %arg2: i32, %arg3: memref<1x32x32xf32, #tpu.memory_space<vmem>>, %arg4: memref<32x32xf32, #tpu.memory_space<vmem>>, %arg5: memref<1x1x32x32xf32, #tpu.memory_space<vmem>>, %arg6: memref<1x1x32x32xf32, #tpu.memory_space<vmem>>) attributes {dimension_semantics = [#tpu.dimension_semantics<parallel>, #tpu.dimension_semantics<parallel>, #tpu.dimension_semantics<arbitrary>], iteration_bounds = array<i64: 1, 2, 1>, scalar_prefetch = 0 : i64, scratch_operands = 0 : i64, tpu.core_type = #tpu.core_type<tc>, window_params = [{transform_indices = @transform_0, window_bounds = array<i64: 1, 32, 32>}, {transform_indices = @transform_1, window_bounds = array<i64: 32, 32>}, {transform_indices = @transform_2, window_bounds = array<i64: 1, 1, 32, 32>}, {transform_indices = @transform_3, window_bounds = array<i64: 1, 1, 32, 32>}]} {
    %c0_i32 = arith.constant 0 : i32
    %0 = arith.cmpi eq, %arg2, %c0_i32 : i32
    %1 = arith.extui %0 : i1 to i32
    %c0_i32_0 = arith.constant 0 : i32
    %2 = arith.cmpi ne, %1, %c0_i32_0 : i32
    scf.if %2 {
      %c0 = arith.constant 0 : index
      %c0_3 = arith.constant 0 : index
      %c0_4 = arith.constant 0 : index
      %6 = vector.load %arg3[%c0, %c0_3, %c0_4] : memref<1x32x32xf32, #tpu.memory_space<vmem>>, vector<1x32x32xf32>
      %7 = vector.shape_cast %6 : vector<1x32x32xf32> to vector<32x32xf32>
      %c0_5 = arith.constant 0 : index
      %c0_6 = arith.constant 0 : index
      %c0_7 = arith.constant 0 : index
      %c0_8 = arith.constant 0 : index
      %8 = vector.load %arg5[%c0_5, %c0_6, %c0_7, %c0_8] : memref<1x1x32x32xf32, #tpu.memory_space<vmem>>, vector<1x1x32x32xf32>
      %9 = vector.shape_cast %8 : vector<1x1x32x32xf32> to vector<32x32xf32>
      %10 = vector.shape_cast %7 : vector<32x32xf32> to vector<1x1x32x32xf32>
      tpu.vector_store %arg5[%c0_5, %c0_6, %c0_7, %c0_8], %10 {strides = array<i32>} : memref<1x1x32x32xf32, #tpu.memory_space<vmem>>, vector<1x1x32x32xf32>,
      %c0_9 = arith.constant 0 : index
      %c0_10 = arith.constant 0 : index
      %11 = vector.load %arg4[%c0_9, %c0_10] : memref<32x32xf32, #tpu.memory_space<vmem>>, vector<32x32xf32>
      %c0_11 = arith.constant 0 : index
      %c0_12 = arith.constant 0 : index
      %c0_13 = arith.constant 0 : index
      %c0_14 = arith.constant 0 : index
      %12 = vector.load %arg6[%c0_11, %c0_12, %c0_13, %c0_14] : memref<1x1x32x32xf32, #tpu.memory_space<vmem>>, vector<1x1x32x32xf32>
      %13 = vector.shape_cast %12 : vector<1x1x32x32xf32> to vector<32x32xf32>
      %14 = vector.shape_cast %11 : vector<32x32xf32> to vector<1x1x32x32xf32>
      tpu.vector_store %arg6[%c0_11, %c0_12, %c0_13, %c0_14], %14 {strides = array<i32>} : memref<1x1x32x32xf32, #tpu.memory_space<vmem>>, vector<1x1x32x32xf32>,
    } else {
    }
    %c0_i32_1 = arith.constant 0 : i32
    %3 = arith.cmpi ne, %arg2, %c0_i32_1 : i32
    %4 = arith.extui %3 : i1 to i32
    %c0_i32_2 = arith.constant 0 : i32
    %5 = arith.cmpi ne, %4, %c0_i32_2 : i32
    scf.if %5 {
      %cst = arith.constant 0.000000e+00 : f32
      %6 = vector.broadcast %cst : f32 to vector<32x32xf32>
      %c0 = arith.constant 0 : index
      %c0_3 = arith.constant 0 : index
      %c0_4 = arith.constant 0 : index
      %c0_5 = arith.constant 0 : index
      %7 = vector.load %arg5[%c0, %c0_3, %c0_4, %c0_5] : memref<1x1x32x32xf32, #tpu.memory_space<vmem>>, vector<1x1x32x32xf32>
      %8 = vector.shape_cast %7 : vector<1x1x32x32xf32> to vector<32x32xf32>
      %9 = vector.shape_cast %6 : vector<32x32xf32> to vector<1x1x32x32xf32>
      tpu.vector_store %arg5[%c0, %c0_3, %c0_4, %c0_5], %9 {strides = array<i32>} : memref<1x1x32x32xf32, #tpu.memory_space<vmem>>, vector<1x1x32x32xf32>,
      %cst_6 = arith.constant 0.000000e+00 : f32
      %10 = vector.broadcast %cst_6 : f32 to vector<32x32xf32>
      %c0_7 = arith.constant 0 : index
      %c0_8 = arith.constant 0 : index
      %c0_9 = arith.constant 0 : index
      %c0_10 = arith.constant 0 : index
      %11 = vector.load %arg6[%c0_7, %c0_8, %c0_9, %c0_10] : memref<1x1x32x32xf32, #tpu.memory_space<vmem>>, vector<1x1x32x32xf32>
      %12 = vector.shape_cast %11 : vector<1x1x32x32xf32> to vector<32x32xf32>
      %13 = vector.shape_cast %10 : vector<32x32xf32> to vector<1x1x32x32xf32>
      tpu.vector_store %arg6[%c0_7, %c0_8, %c0_9, %c0_10], %13 {strides = array<i32>} : memref<1x1x32x32xf32, #tpu.memory_space<vmem>>, vector<1x1x32x32xf32>,
    } else {
    }
    return
  }
  func.func @transform_0(%arg0: i32, %arg1: i32, %arg2: i32) -> (i32, i32, i32) {
    %c0_i32 = arith.constant 0 : i32
    %c0_i32_0 = arith.constant 0 : i32
    return %arg1, %arg0, %c0_i32 : i32, i32, i32
  }
  func.func @transform_1(%arg0: i32, %arg1: i32, %arg2: i32) -> (i32, i32) {
    %c0_i32 = arith.constant 0 : i32
    %c0_i32_0 = arith.constant 0 : i32
    return %arg0, %c0_i32 : i32, i32
  }
  func.func @transform_2(%arg0: i32, %arg1: i32, %arg2: i32) -> (i32, i32, i32, i32) {
    %c0_i32 = arith.constant 0 : i32
    %c0_i32_0 = arith.constant 0 : i32
    return %arg1, %arg2, %arg0, %c0_i32 : i32, i32, i32, i32
  }
  func.func @transform_3(%arg0: i32, %arg1: i32, %arg2: i32) -> (i32, i32, i32, i32) {
    %c0_i32 = arith.constant 0 : i32
    %c0_i32_0 = arith.constant 0 : i32
    return %arg1, %arg2, %arg0, %c0_i32 : i32, i32, i32, i32
  }
}

</mosaic_0001>

<bundles_post_ra>
// kernel: unsqueeze_cons_layer.1
= control target key start
LH: loop header
LB: loop body
LE: loop exit
PB: predicated region body
PF: predicated region fallthrough
CT: control target
= control target key end

     0   :  { %9 = vsyncpa [#allocation3], 0  ;;  %s854_s0 = inlined_call_operand.vmem [shape: f32[2,32,32], index: 0, kind: input, shape index: {}]   ;;  %s855_s1 = inlined_call_operand.vmem [shape: f32[32,32], index: 1, kind: input, shape index: {}]   ;;  %s856_s2 = inlined_call_operand.hbm [shape: f32[2,1,32,32], index: 2, kind: output, shape index: {0}]   ;;  %s857_s3 = inlined_call_operand.hbm [shape: f32[2,1,32,32], index: 3, kind: output, shape index: {1}]  }
   0x1   :  { %11 = vsyncpa [#allocation3 + $0x1], 0 }
   0x2   :  { %12 = vsyncpa [#allocation5], 0 }
   0x3   :  { %14 = vsyncpa [#allocation5 + $0x1], 0  ;;  %s679_s12 = smov 0   ;;  %s681_s13 = smov 0  }
   0x4   :  { %s683_s14 = smov 0   ;;  %s685_s15 = smov 0  }
   0x5   :  { %s687_s16 = smov 0   ;;  %s689_s17 = smov 0  }
   0x6 LB: > { %s460_s18 = sadd.s32 4294967295, %s653_s17   ;;  %s461_s19 = sadd.s32 4294967294, %s653_s17   ;;  %s653_s17 = sphi %s689_s17, %s20_s17   ;;  %s649_s16 = sphi %s687_s16, %s864_s16   ;;  %s645_s15 = sphi %s685_s15, %s863_s15   ;;  %s641_s14 = sphi %s683_s14, %s862_s14   ;;  %s637_s13 = sphi %s681_s13, %s861_s13   ;;  %s633_s12 = sphi %s679_s12, %s860_s12  }
   0x7   : > { %s35_s20 = sadd.s32 1, %s649_s16  ;;  %s104_s21 = sadd.s32 1, %s641_s14 }
   0x8   : > { %p37_p0 = scmp.ge.s32.totalorder %s35_s20, 2  ;;  %p114_p1 = scmp.ne.s32.totalorder %s641_s14, %s637_s13 }
   0x9   : > { %p115_p2 = scmp.eq.s32.totalorder %s460_s18, 1  ;;  %p120_p3 = scmp.ne.s32.totalorder %s637_s13, %s633_s12 }
   0xa   : > { %s866_s20 = smov (%p37_p0, %s35_s20), 0  ;;  %p121_p5 = scmp.eq.s32.totalorder %s461_s19, 1 }
   0xb   : > { %p719_p4 = por %p115_p2, %p114_p1  ;;  %s97_s23 = ssub.s32 %s649_s16, %s866_s20 }
   0xc   : > { %p465_p6 = scmp.ge.s32.totalorder %s653_s17, 1  ;;  %p102_p7 = scmp.eq.s32.totalorder %s97_s23, 0 }
   0xd   : > { %p726_p8 = por %p121_p5, %p120_p3  ;;  %p191_p9 = scmp.lt.s32.totalorder %s653_s17, 3 }
   0xe   : > { %s732_s25 = scalar_select %p102_p7, %s641_s14, %s104_s21  }
   0xf   : > { %p192_p10 = pnand %p465_p6, %p191_p9 }
  0x10   : > { %s735_s26 = sand.u32 (!%p192_p10), 1, %s637_s13   ;;  %p230_p11 = scmp.lt.s32.totalorder (!%p192_p10), %s645_s15, 1  ;;  %v260_v0 = vld [vmem:[%s855_s1] sm:$0xff] (!%p192_p10)  ;;  %vm255_vm0 = vcmask (!%p192_p10), 261120   ;;  %v261_v1 = vld [vmem:[%s855_s1 + $0x8] sm:$0xff] (!%p192_p10)  ;;  %v262_v2 = vld [vmem:[%s855_s1 + $0x10] sm:$0xff] (!%p192_p10) }
  0x11   : > { %195 = sbr.rel (%p192_p10) target bundleno = 74 (0x4a), region = 28  ;;  %s466_s27 = sshll.u32 (!%p192_p10), %s735_s26, 5  ;;  %v263_v3 = vld [vmem:[%s855_s1 + $0x18] sm:$0xff] (!%p192_p10) }
  0x12   : > { %s221_s10 = scalar_lea.vmem (!%p192_p10), [#allocation2], %s466_s27  ;;  %s228_s19 = scalar_lea.vmem (!%p192_p10), [#allocation4], %s466_s27 }
  0x13   : > { %s304_s11 = sshll.u32 (!%p192_p10), %s221_s10, 4  ;;  %264 = vst.msk [vmem:[%s228_s19] sm:$0xff] (!%p192_p10), %vm255_vm0, %v260_v0  ;;  %265 = vst.msk [vmem:[%s228_s19 + $0x8] sm:$0xff] (!%p192_p10), %vm255_vm0, %v261_v1  ;;  %s324_s29 = sshll.u32 (!%p192_p10), %s228_s19, 4  ;;  %s752_s11 = int_to_ptr.vmem [resolvable:$true] %s304_s11  ;;  %s761_s29 = int_to_ptr.vmem [resolvable:$true] %s324_s29 }
  0x14   : > { %266 = vst.msk [vmem:[%s228_s19 + $0x10] sm:$0xff] (!%p192_p10), %vm255_vm0, %v262_v2  ;;  %267 = vst.msk [vmem:[%s228_s19 + $0x18] sm:$0xff] (!%p192_p10), %vm255_vm0, %v263_v3  ;;  %s479_s27 = sshll.u32 (!%p192_p10), %s645_s15, 9 }
  0x15   : > { %s770_s5 = scalar_lea.hbm (!%p192_p10), %s856_s2, %s479_s27  ;;  %s776_s8 = scalar_lea.hbm (!%p192_p10), %s857_s3, %s479_s27 }
  0x18   : > { %s231_s9 = scalar_select %p230_p11, %s645_s15, 1 }
  0x19   : > { %s282_s15 = scalar_lea.sflag [#allocation3], %s735_s26 }
  0x1a   : > { %s478_s18 = sshll.u32 %s231_s9, 5  ;;  %s543_s9 = scalar_lea.vmem %s752_s11, 512 }
  0x1b   : > { %s237_s28 = scalar_lea.vmem %s854_s0, %s478_s18  ;;  %p544_p12 = scmp.ne.s32.totalorder %s752_s11, %s543_s9 }
  0x1c   : > { %v251_v4 = vld [vmem:[%s237_s28] sm:$0xff]  ;;  %v252_v5 = vld [vmem:[%s237_s28 + $0x8] sm:$0xff]  ;;  %v253_v6 = vld [vmem:[%s237_s28 + $0x10] sm:$0xff]  ;;  %s655_s18 = smov [#allocation2]  }
  0x1d   : > { %256 = vst.msk [vmem:[%s221_s10] sm:$0xff] %vm255_vm0, %v251_v4  ;;  %257 = vst.msk [vmem:[%s221_s10 + $0x8] sm:$0xff] %vm255_vm0, %v252_v5  ;;  %v254_v7 = vld [vmem:[%s237_s28 + $0x18] sm:$0xff]  ;;  %p545_p13 = pnand %p544_p12, %p719_p4  ;;  %s547_s19 = sshll.u32 %s655_s18, 4  ;;  %s548_s19 = int_to_ptr.vmem [resolvable:$false] %s547_s19 }
  0x1e   : > { %258 = vst.msk [vmem:[%s221_s10 + $0x10] sm:$0xff] %vm255_vm0, %v253_v6  ;;  %259 = vst.msk [vmem:[%s221_s10 + $0x18] sm:$0xff] %vm255_vm0, %v254_v7  ;;  %s549_s21 = scalar_lea.vmem %s548_s19, 1024  ;;  %p550_p1 = scmp.lt.s32.totalorder %s752_s11, %s548_s19 }
  0x1f   : > { %p546_p0 = pneg %p545_p13  ;;  %p551_p2 = scmp.lt.s32.totalorder %s549_s21, %s543_s9 }
  0x21   : > { %p552_p3 = por %p551_p2, %p550_p1 }
  0x23   : > { %p553_p5 = pnand %p552_p3, %p546_p0 }
  0x25   : > { %556 = shalt.err (!%p553_p5)
}
  0x26   : > { %s557_s10 = scalar_lea.hbm %s770_s5, 512  ;;  %s561_s27 = scalar_lea.hbm %s856_s2, 1024 }
  0x27   : > { %p558_p6 = scmp.ne.s32.totalorder %s770_s5, %s557_s10  ;;  %p562_p10 = scmp.lt.u32.totalorder %s770_s5, %s856_s2 }
  0x28   : > { %p563_p11 = scmp.lt.u32.totalorder %s561_s27, %s557_s10  ;;  %p565_p13 = scmp.lt.u32.totalorder %s557_s10, %s770_s5 }
  0x29   : > { %p559_p7 = pnand %p558_p6, %p719_p4 }
  0x2a   : > { %p564_p12 = por %p563_p11, %p562_p10 }
  0x2b   : > { %p560_p9 = pneg %p559_p7 }
  0x2c   : > { %p566_p0 = por %p565_p13, %p564_p12 }
  0x2e   : > { %p567_p1 = pnand %p566_p0, %p560_p9 }
  0x30   : > { %570 = shalt.err (!%p567_p1)
}
  0x31   : > { %s656_s6 = smov 128   ;;  %s657_s7 = smov 8  }
  0x32   : > { %481 = dma.vmem_to_hbm [thread:$0]  (%p719_p4), %s752_s11, 512, %s770_s5, %s282_s15, %s656_s6, %s656_s6, %s657_s7  }
  0x33   : > { %s287_s9 = scalar_lea.sflag [#allocation5], %s735_s26  ;;  %s571_s18 = scalar_lea.vmem %s761_s29, 512 }
  0x34   : > { %p572_p2 = scmp.ne.s32.totalorder %s761_s29, %s571_s18  ;;  %s658_s19 = smov [#allocation4]  }
  0x35   : > { %s575_s21 = sshll.u32 %s658_s19, 4  ;;  %s576_s21 = int_to_ptr.vmem [resolvable:$false] %s575_s21 }
  0x36   : > { %p573_p3 = pnand %p572_p2, %p719_p4  ;;  %s577_s10 = scalar_lea.vmem %s576_s21, 1024 }
  0x37   : > { %p578_p6 = scmp.lt.s32.totalorder %s761_s29, %s576_s21  ;;  %p579_p7 = scmp.lt.s32.totalorder %s577_s10, %s571_s18 }
  0x38   : > { %p574_p5 = pneg %p573_p3 }
  0x39   : > { %p580_p9 = por %p579_p7, %p578_p6 }
  0x3b   : > { %p581_p10 = pnand %p580_p9, %p574_p5 }
  0x3d   : > { %584 = shalt.err (!%p581_p10)
}
  0x3e   : > { %s585_s11 = scalar_lea.hbm %s776_s8, 512  ;;  %s589_s23 = scalar_lea.hbm %s857_s3, 1024 }
  0x3f   : > { %p586_p11 = scmp.ne.s32.totalorder %s776_s8, %s585_s11  ;;  %p590_p0 = scmp.lt.u32.totalorder %s776_s8, %s857_s3 }
  0x40   : > { %p591_p1 = scmp.lt.u32.totalorder %s589_s23, %s585_s11  ;;  %p593_p3 = scmp.lt.u32.totalorder %s585_s11, %s776_s8 }
  0x41   : > { %p587_p12 = pnand %p586_p11, %p719_p4 }
  0x42   : > { %p592_p2 = por %p591_p1, %p590_p0 }
  0x43   : > { %p588_p13 = pneg %p587_p12 }
  0x44   : > { %p594_p5 = por %p593_p3, %p592_p2 }
  0x46   : > { %p595_p6 = pnand %p594_p5, %p588_p13 }
  0x48   : > { %598 = shalt.err (!%p595_p6)
}
  0x49   : > { %482 = dma.vmem_to_hbm [thread:$0]  (%p719_p4), %s761_s29, 512, %s776_s8, %s287_s9, %s656_s6, %s656_s6, %s657_s7  }
  0x4a PF: > { %p492_p7 = scmp.ge.s32.totalorder %s653_s17, 2  ;;  %s339_s30 = sand.u32 1, %s633_s12  }
  0x4b   : > { %s340_s4 = scalar_lea.sflag [#allocation3], %s339_s30 }
  0x4c   : > { %p486_p9 = pnand %p492_p7, %p726_p8 }
  0x4e   : > { %624 = dma.done.wait (!%p486_p9), %s340_s4, 512  }
  0x4f   : > { %626 = vsyncadd (!%p486_p9), %s340_s4, 4294966784  ;;  %s349_s22 = scalar_lea.sflag [#allocation5], %s339_s30 }
  0x50   : > { %628 = dma.done.wait (!%p486_p9), %s349_s22, 512  }
  0x51   : > { %630 = vsyncadd (!%p486_p9), %s349_s22, 4294966784  ;;  %s20_s17 = sadd.s32 1, %s653_s17   ;;  %s860_s12 = smov %s637_s13 }
  0x52   : > { %p17_p10 = scmp.ge.s32.totalorder %s20_s17, 4   ;;  %s861_s13 = smov %s641_s14 }
  0x53   : > { %s862_s14 = smov %s732_s25  ;;  %s863_s15 = smov %s649_s16 }
  0x54   : > { %s864_s16 = smov %s866_s20  ;;  %19 = sbr.rel (!%p17_p10) target bundleno = 6 (0x6), region = 91 }
  0x5b   :  { %354 = vsyncpa [#allocation3], 1 }
  0x5c   :  { %356 = vsyncpa [#allocation3 + $0x1], 1 }
  0x5d   :  { %357 = vsyncpa [#allocation5], 1 }
  0x5e   :  { %359 = vsyncpa [#allocation5 + $0x1], 1 }

</bundles_post_ra>
